<compile_context>
chip_gen: v7x
topology: tpu7x:2x2x1
jax: 0.10.0
libtpu: 0.0.40
codegen_flags: <defaults>
</compile_context>

<pallas_src>
import numpy as np
import jax
import jax.numpy as jnp
from jax import lax
from jax.experimental import pallas as pl
from jax.experimental.pallas import tpu as pltpu


# ----------------------------------------------------------------------------
# Pallas kernel: action contribution of the summed return for a lane-tile of
# candidates.  Pure VPU: lane-broadcast the per-row weight, FMA, sublane-sum.
# ----------------------------------------------------------------------------
def _returns_kernel(act_ref, wa_ref, out_ref):
    # act_ref : (H*A, TILE_N) bf16  candidate action sequences, candidates on lanes
    # wa_ref  : (H*A, 1)      f32   closed-form weight per action entry
    # out_ref : (1, TILE_N)   f32   sum_t act_t @ v_t  per candidate (lane-dense)
    x = act_ref[...].astype(jnp.float32)
    w = wa_ref[...]                               # broadcasts along the lane axis
    out_ref[...] = jnp.sum(x * w, axis=0, keepdims=True)


def candidate_action_returns(act_T, wa_col, *, tile_n):
    """Action part of the summed H-step return for every candidate.

    act_T  : (H*A, n_pad) bf16   flattened candidate actions, candidates on lanes
    wa_col : (H*A, 1)     f32    closed-form per-entry weights
    -> (n_pad,) float32
    """
    HA, n_pad = act_T.shape
    assert n_pad % tile_n == 0
    out = pl.pallas_call(
        _returns_kernel,
        out_shape=jax.ShapeDtypeStruct((1, n_pad), jnp.float32),
        grid_spec=pltpu.PrefetchScalarGridSpec(
            num_scalar_prefetch=0,
            grid=(n_pad // tile_n,),
            in_specs=[
                pl.BlockSpec((HA, tile_n), lambda i: (0, i)),   # actions
                pl.BlockSpec((HA, 1), lambda i: (0, 0)),        # weights (resident)
            ],
            out_specs=pl.BlockSpec((1, tile_n), lambda i: (0, i)),
        ),
        compiler_params=pltpu.CompilerParams(
            dimension_semantics=("parallel",)),                  # megacore on v7x
    )(act_T, wa_col)
    return out[0]


# ----------------------------------------------------------------------------
# Closed-form fold of the linear H-step rollout into per-feature weights.
# Computed in float64 on host so powers of A_mat do not amplify rounding.
#   ret = mean0 @ u + sum_k act_k @ v_k
#   u   = (sum_{t<H} A^t) w_s
#   v_k = w_a + B (sum_{j<=H-2-k} A^j) w_s
# ----------------------------------------------------------------------------
def _closed_form_reward_weights(A_mat, B_mat, w_s, w_a, horizon):
    A64 = np.asarray(A_mat, dtype=np.float64)
    B64 = np.asarray(B_mat, dtype=np.float64)
    ws64 = np.asarray(w_s, dtype=np.float64)
    wa64 = np.asarray(w_a, dtype=np.float64)
    S = A64.shape[0]
    eye = np.eye(S, dtype=np.float64)
    cumsums = [eye]                      # cumsums[m] = sum_{j=0}^{m} A^j
    P = eye
    for _ in range(1, horizon):
        P = P @ A64
        cumsums.append(cumsums[-1] + P)
    u = cumsums[horizon - 1] @ ws64                      # (S, 1)
    v_parts = []
    for k in range(horizon):
        m = horizon - 2 - k
        v_k = wa64 + B64 @ (cumsums[m] @ ws64) if m >= 0 else wa64
        v_parts.append(v_k)
    v = np.concatenate(v_parts, axis=0)                  # (H*A, 1)
    return jnp.asarray(u, jnp.float32), jnp.asarray(v, jnp.float32)


# ----------------------------------------------------------------------------
# CEM planner: one jitted device program per plan call (sampling, Pallas
# returns kernel, top_k, refit, early stop) wrapped around the kernel above.
# ----------------------------------------------------------------------------
class MPCPlannerCemPallas:
    def __init__(self, action_dim, state_dim, planning_horizon,
                 optimisation_iters=30, candidates=1000, top_candidates=100,
                 tol=0.01, seed=0):
        self.action_dim = action_dim
        self.state_dim = state_dim
        self.planning_horizon = planning_horizon
        self.optimisation_iters = optimisation_iters
        self.candidates = candidates
        self.top_candidates = top_candidates
        self.tol = tol
        self.key = jax.random.PRNGKey(seed)

        # Deterministic synthetic transition / reward model parameters.
        k = jax.random.PRNGKey(1234)
        k1, k2, k3, k4 = jax.random.split(k, 4)
        S, A = state_dim, action_dim
        self.A_mat = (0.9 * jnp.eye(S, dtype=jnp.float32)
                      + 0.05 * jax.random.normal(k1, (S, S), dtype=jnp.float32))
        self.B_mat = 0.1 * jax.random.normal(k2, (A, S), dtype=jnp.float32)
        self.w_s = jax.random.normal(k3, (S, 1), dtype=jnp.float32)
        self.w_a = 0.1 * jax.random.normal(k4, (A, 1), dtype=jnp.float32)

        # Closed-form rollout weights (float64 host precompute, once).
        self.u_col, self.wa_col = _closed_form_reward_weights(
            self.A_mat, self.B_mat, self.w_s, self.w_a, planning_horizon)

        self._plan = jax.jit(self._plan_impl)

    # ----- one full plan (all CEM iterations) as a single device program -----
    def _plan_impl(self, key, mean, lo, hi):
        B = mean.shape[0]
        S, A, H = self.state_dim, self.action_dim, self.planning_horizon
        C, K = self.candidates, self.top_candidates

        # Pad the candidate axis per batch row to a lane multiple; padded
        # candidates are sliced off before top_k so they can never be picked.
        C_pad = pl.cdiv(C, 128) * 128
        n_pad = B * C_pad
        # 2 lane-blocks when divisibility allows (one per v7x TensorCore);
        # otherwise a single block (grid=(1,)) -- minimal per-step overhead.
        tile_n = n_pad // 2 if (n_pad % 256 == 0) else n_pad

        # Mean contribution of the return: constant across iterations and per
        # batch row (ranking-invariant), computed once outside the kernel.
        base = mean @ self.u_col                                   # (B, 1)
        wa_col = self.wa_col                                       # (H*A, 1)

        # Action-distribution state is carried in the kernel-native
        # (H, A, B, 1) layout so no per-iteration transpose is needed.
        a_mean0 = jnp.zeros((H, A, B, 1), dtype=jnp.float32)
        a_std0 = jnp.ones((H, A, B, 1), dtype=jnp.float32) * hi

        def cem_step(key, a_mean, a_std):
            key, sub = jax.random.split(key)
            samples = jax.random.normal(sub, (H, A, B, C_pad), dtype=jnp.float32)
            actions = jnp.clip(a_mean + a_std * samples, lo, hi)   # (H,A,B,C_pad)
            # Layout-preserving reshape to (H*A, B*C_pad): rows h-major/a-minor
            # match wa_col; columns b-major/c-minor match returns.reshape(B,·).
            act_T = actions.reshape(H * A, n_pad).astype(jnp.bfloat16)
            act_ret = candidate_action_returns(act_T, wa_col, tile_n=tile_n)
            returns = act_ret.reshape(B, C_pad)[:, :C] + base      # (B, C)
            _, topk = lax.top_k(returns, K)                        # (B, K)
            flat = (topk
                    + C_pad * jnp.arange(B, dtype=topk.dtype)[:, None]).reshape(-1)
            best = actions.reshape(H, A, n_pad)[:, :, flat].reshape(H, A, B, K)
            a_mean = jnp.mean(best, axis=3, keepdims=True)
            a_std = jnp.std(best, axis=3, keepdims=True)   # ddof=0 == unbiased=False
            return key, a_mean, a_std

        def body(state):
            i, key, a_mean, a_std = state
            key, a_mean, a_std = cem_step(key, a_mean, a_std)
            return i + 1, key, a_mean, a_std

        if B * A == 1:
            # Early stop mirrors the torch `.item()` path (only defined for
            # scalar action_std_dev[0]); checked after each iteration.
            def cond(state):
                i, _, _, a_std = state
                keep = jnp.logical_or(i == 0, a_std[0, 0, 0, 0] > self.tol)
                return jnp.logical_and(i < self.optimisation_iters, keep)
        else:
            def cond(state):
                return state[0] < self.optimisation_iters

        _, _, a_mean, _ = lax.while_loop(
            cond, body, (jnp.array(0, jnp.int32), key, a_mean0, a_std0))

        # Back to the torch layout (H, B, 1, A), then squeeze(dim=1)[0].
        a_mean = jnp.transpose(a_mean, (0, 2, 3, 1))               # (H, B, 1, A)
        if a_mean.shape[1] == 1:       # torch .squeeze(dim=1) drops only if size 1
            a_mean = jnp.squeeze(a_mean, axis=1)
        return a_mean[0]

    def __call__(self, initial_state_belief, action_range):
        mean, cov = initial_state_belief
        # TODO(synk): covariance propagation is action-independent for the
        # synthetic mean-only reward and cannot change the CEM ranking, so it
        # is not rolled out; a covariance-aware reward model would need it.
        del cov
        assert action_range[0] == -action_range[1]
        lo, hi = float(action_range[0]), float(action_range[1])
        self.key, sub = jax.random.split(self.key)
        return self._plan(sub, mean, lo, hi)


# ----------------------------------------------------------------------------
if __name__ == "__main__":
    B = 2           # batch
    S = 16          # state_dim
    A = 4           # action_dim
    H = 8           # planning horizon
    CANDIDATES = 512
    TOP_K = 64
    ITERS = 3

    key = jax.random.PRNGKey(0)
    k_mean, k_cov = jax.random.split(key)
    init_mean = jax.random.normal(k_mean, (B, S), dtype=jnp.float32)
    # positive-definite-ish covariance (interface only; see TODO above)
    L = 0.1 * jax.random.normal(k_cov, (B, S, S), dtype=jnp.float32)
    init_cov = jnp.einsum("bij,bkj->bik", L, L) + jnp.eye(S)[None] * 1e-2

    planner = MPCPlannerCemPallas(
        action_dim=A, state_dim=S, planning_horizon=H,
        optimisation_iters=ITERS, candidates=CANDIDATES,
        top_candidates=TOP_K, tol=0.01, seed=0)

    # --- sanity check: closed-form Pallas returns == explicit H-step rollout ---
    N_chk = 256
    kc1, kc2 = jax.random.split(jax.random.PRNGKey(42))
    mean_chk = jax.random.normal(kc1, (N_chk, S), dtype=jnp.float32)
    acts_chk = jnp.clip(jax.random.normal(kc2, (H, N_chk, A),
                                          dtype=jnp.float32), -1.0, 1.0)
    acts_bf = acts_chk.astype(jnp.bfloat16)
    acts_ref = acts_bf.astype(jnp.float32)          # same rounding as the kernel input
    st = mean_chk
    ref = jnp.zeros((N_chk,), dtype=jnp.float32)
    for t in range(H):
        ref = ref + (st @ planner.w_s + acts_ref[t] @ planner.w_a)[:, 0]
        st = st @ planner.A_mat + acts_ref[t] @ planner.B_mat
    # kernel layout: rows h-major / a-minor, candidates on lanes
    act_T_chk = jnp.transpose(acts_bf, (0, 2, 1)).reshape(H * A, N_chk)
    got = (candidate_action_returns(act_T_chk, planner.wa_col, tile_n=N_chk)
           + (mean_chk @ planner.u_col)[:, 0])
    got = jax.block_until_ready(got)
    assert jnp.allclose(got, ref, rtol=2e-3, atol=2e-3), "kernel returns mismatch"

    # --- full CEM planning call (single jitted device program) ---
    selected = planner((init_mean, init_cov), action_range=(-1.0, 1.0))
    selected = jax.block_until_ready(selected)
    assert selected.shape == (B, 1, A)   # matches torch squeeze(dim=1)[0] for B>1
    assert jnp.all(jnp.isfinite(selected))
    assert jnp.all(jnp.abs(selected) <= 1.0 + 1e-6)
    print("KERNEL_OK")
</pallas_src>

<mosaic_0001>
module attributes {stable_mosaic.version = 11 : i64} {
  func.func @_returns_kernel(%arg0: i32, %arg1: memref<32x256xbf16, #tpu.memory_space<vmem>>, %arg2: memref<32x1xf32, #tpu.memory_space<vmem>>, %arg3: memref<1x256xf32, #tpu.memory_space<vmem>>) attributes {dimension_semantics = [#tpu.dimension_semantics<parallel>], iteration_bounds = array<i64: 1>, scalar_prefetch = 0 : i64, scratch_operands = 0 : i64, tpu.core_type = #tpu.core_type<tc>, window_params = [{transform_indices = @transform_0, window_bounds = array<i64: 32, 256>}, {pipeline_mode = #tpu.pipeline_mode<synchronous>, transform_indices = @transform_1, window_bounds = array<i64: 32, 1>}, {transform_indices = @transform_2, window_bounds = array<i64: 1, 256>}]} {
    %c0 = arith.constant 0 : index
    %c0_0 = arith.constant 0 : index
    %0 = vector.load %arg1[%c0, %c0_0] : memref<32x256xbf16, #tpu.memory_space<vmem>>, vector<32x256xbf16>
    %1 = arith.extf %0 : vector<32x256xbf16> to vector<32x256xf32>
    %c0_1 = arith.constant 0 : index
    %c0_2 = arith.constant 0 : index
    %2 = vector.load %arg2[%c0_1, %c0_2] : memref<32x1xf32, #tpu.memory_space<vmem>>, vector<32x1xf32>
    %3 = vector.broadcast %2 : vector<32x1xf32> to vector<32x256xf32>
    %4 = arith.mulf %1, %3 : vector<32x256xf32>
    %cst = arith.constant dense<0.000000e+00> : vector<256xf32>
    %5 = vector.multi_reduction <add>, %4, %cst [0] : vector<32x256xf32> to vector<256xf32>
    %6 = vector.shape_cast %5 : vector<256xf32> to vector<1x256xf32>
    %c0_3 = arith.constant 0 : index
    %c0_4 = arith.constant 0 : index
    %7 = vector.load %arg3[%c0_3, %c0_4] : memref<1x256xf32, #tpu.memory_space<vmem>>, vector<1x256xf32>
    tpu.vector_store %arg3[%c0_3, %c0_4], %6 {strides = array<i32>} : memref<1x256xf32, #tpu.memory_space<vmem>>, vector<1x256xf32>,
    return
  }
  func.func @transform_0(%arg0: i32) -> (i32, i32) {
    %c0_i32 = arith.constant 0 : i32
    %c0_i32_0 = arith.constant 0 : i32
    return %c0_i32, %arg0 : i32, i32
  }
  func.func @transform_1(%arg0: i32) -> (i32, i32) {
    %c0_i32 = arith.constant 0 : i32
    %c0_i32_0 = arith.constant 0 : i32
    %c0_i32_1 = arith.constant 0 : i32
    return %c0_i32, %c0_i32_0 : i32, i32
  }
  func.func @transform_2(%arg0: i32) -> (i32, i32) {
    %c0_i32 = arith.constant 0 : i32
    %c0_i32_0 = arith.constant 0 : i32
    return %c0_i32, %arg0 : i32, i32
  }
}

</mosaic_0001>

<bundles_post_ra>
// kernel: tpu_custom_call.1
= control target key start
LH: loop header
LB: loop body
LE: loop exit
PB: predicated region body
PF: predicated region fallthrough
CT: control target
= control target key end

     0   :  { %v140_v2 = vmov 0   ;;  %s194_s0 = inlined_call_operand.vmem [shape: bf16[32,256], index: 0, kind: input, shape index: {}]   ;;  %s195_s1 = inlined_call_operand.vmem [shape: f32[32,1], index: 1, kind: input, shape index: {}]   ;;  %s196_s2 = inlined_call_operand.hbm [shape: f32[1,256], index: 2, kind: output, shape index: {}]  }
   0x1   :  { %v26_v0 = vld [vmem:[%s195_s1 + $0x10] sm:$0xff]  ;;  %v24_v1 = vld [vmem:[%s195_s1] sm:$0xff]  ;;  %115 = vset.pattern.permute.xlu1 %v140_v2  ;;  %114 = vset.pattern.permute.xlu0 %v140_v2 }
   0x2   :  { %40 = vperm.xlu1 %115, %v26_v0   ;;  %30 = vperm.xlu0 %114, %v24_v1  }
   0x3   :  { %7 = vsyncpa [#allocation3], 0  ;;  %v27_v3 = vld [vmem:[%s195_s1 + $0x18] sm:$0xff]  ;;  %v25_v4 = vld [vmem:[%s195_s1 + $0x8] sm:$0xff]  ;;  %v141_v39 = vmov 1966171168   ;;  %v80_v41 = vlaneseq }
   0x4   :  { %v12_v5 = vld [vmem:[%s194_s0] sm:$0xff]  ;;  %v13_v6 = vld [vmem:[%s194_s0 + $0x8] sm:$0xff]  ;;  %v14_v8 = vld [vmem:[%s194_s0 + $0x10] sm:$0xff]  ;;  %v78_v40 = vunpack.c.l.s4 %v141_v39 }
   0x5   :  { %v16_v10 = vunpack.c.l.bf16 %v12_v5  ;;  %v17_v11 = vunpack.c.h.bf16 %v12_v5  ;;  %v15_v12 = vld [vmem:[%s194_s0 + $0x18] sm:$0xff]  ;;  %v18_v13 = vunpack.c.l.bf16 %v13_v6  ;;  %v19_v14 = vunpack.c.h.bf16 %v13_v6  ;;  %s142_s0 = smov [#allocation2]  }
   0x6   :  { %45 = vperm.xlu1 %115, %v27_v3   ;;  %35 = vperm.xlu0 %114, %v25_v4   ;;  %v20_v15 = vunpack.c.l.bf16 %v14_v8  ;;  %v21_v16 = vunpack.c.h.bf16 %v14_v8  ;;  %v22_v17 = vunpack.c.l.bf16 %v15_v12  ;;  %v23_v18 = vunpack.c.h.bf16 %v15_v12  ;;  %s103_s24 = sshll.u32 %s142_s0, 4  ;;  %s104_s24 = int_to_ptr.vmem [resolvable:$true] %s103_s24 }
   0x7   :  { %v79_v46 = vunpack.c.0.s8 %v78_v40  ;;  %v81_v47 = vshrl.u32 %v80_v41, 7  ;;  %vm94_vm0 = vcmp.lt.s32.totalorder %v80_v41, 256  ;;  %s116_s25 = scalar_lea.vmem %s104_s24, 32  ;;  %p121_p1 = scmp.lt.s32.totalorder %s104_s24, %s104_s24 }
   0x8   :  { %p117_p0 = scmp.ne.s32.totalorder %s104_s24, %s116_s25  ;;  %p122_p2 = scmp.lt.s32.totalorder %s116_s25, %s116_s25 }
   0x9   :  { %v82_v52 = vsub.s32 %v79_v46, %v81_v47 }
   0xa   :  { %p123_p3 = por %p122_p2, %p121_p1 }
   0xc   :  { %p124_p4 = pnand %p123_p3, %p117_p0 }
  0x81   :  { %v41_v7 = vpop.permute.xlu1 %40  ;;  %v31_v9 = vpop.permute.xlu0 %30 }
  0x82   :  { %v48_v20 = vmul.f32 %v31_v9, %v16_v10  ;;  %v49_v21 = vmul.f32 %v31_v9, %v17_v11  ;;  %v52_v25 = vmul.f32 %v41_v7, %v20_v15  ;;  %v53_v26 = vmul.f32 %v41_v7, %v21_v16 }
  0x85   :  { %v36_v19 = vpop.permute.xlu0 %35  ;;  %v46_v24 = vpop.permute.xlu1 %45 }
  0x86   :  { %v50_v22 = vmul.f32 %v36_v19, %v18_v13  ;;  %v51_v23 = vmul.f32 %v36_v19, %v19_v14  ;;  %v54_v29 = vmul.f32 %v46_v24, %v22_v17  ;;  %v55_v30 = vmul.f32 %v46_v24, %v23_v18 }
  0x88   :  { %v56_v27 = vadd.f32 %v50_v22, %v48_v20  ;;  %v65_v28 = vadd.f32 %v51_v23, %v49_v21 }
  0x8a   :  { %v57_v31 = vadd.f32 %v56_v27, %v52_v25  ;;  %v66_v32 = vadd.f32 %v65_v28, %v53_v26 }
  0x8c   :  { %v58_v33 = vadd.f32 %v57_v31, %v54_v29  ;;  %v67_v34 = vadd.f32 %v66_v32, %v55_v30 }
  0x8e   :  { %v59_v35 = vrot.slane %v58_v33, 4  ;;  %v68_v36 = vrot.slane %v67_v34, 4 }
  0x90   :  { %v60_v37 = vadd.f32 %v59_v35, %v58_v33  ;;  %v69_v38 = vadd.f32 %v68_v36, %v67_v34 }
  0x92   :  { %v61_v42 = vrot.slane %v60_v37, 2  ;;  %v70_v43 = vrot.slane %v69_v38, 2 }
  0x94   :  { %v62_v44 = vadd.f32 %v61_v42, %v60_v37  ;;  %v71_v45 = vadd.f32 %v70_v43, %v69_v38 }
  0x96   :  { %v63_v48 = vrot.slane %v62_v44, 1  ;;  %v72_v49 = vrot.slane %v71_v45, 1 }
  0x98   :  { %v64_v50 = vadd.f32 %v63_v48, %v62_v44  ;;  %v73_v51 = vadd.f32 %v72_v49, %v71_v45 }
  0x9a   :  { %v76_v53 = vcombine.low %v64_v50, %v73_v51 }
  0x9c   :  { %v83_v54 = vrot.slane %v76_v53, %v82_v52 }
  0x9e   :  { %v90_v55 = vrot.slane %v83_v54, %v82_v52 }
  0xa0   :  { %96 = vst.msk [vmem:[#allocation2] sm:$0x3] %vm94_vm0, %v90_v55 }
  0xa1   :  { %127 = shalt.err (!%p124_p4)
}
  0xa2   :  { %s128_s28 = scalar_lea.hbm %s196_s2, 32 }
  0xa3   :  { %p129_p5 = scmp.ne.s32.totalorder %s196_s2, %s128_s28  ;;  %p132_p6 = scmp.lt.u32.totalorder %s128_s28, %s196_s2 }
  0xa5   :  { %p134_p7 = pnand %p132_p6, %p129_p5 }
  0xa7   :  { %137 = shalt.err (!%p134_p7)
}
  0xa8   :  { %106 = dma.vmem_to_hbm [thread:$0]  %s104_s24, 32, %s196_s2, [#allocation3]  }
  0xa9   :  { %138 = dma.done.wait [#allocation3], 32  }
  0xaa   :  { %139 = vsyncadd [#allocation3], 4294967264 }
  0xab   :  { %110 = vsyncpa [#allocation3], 1 }

</bundles_post_ra>
